<compile_context>
chip_gen: v7x
topology: tpu7x:2x2x1
jax: 0.10.0
libtpu: 0.0.40
codegen_flags: <defaults>
</compile_context>

<pallas_src>
import functools

import jax
import jax.numpy as jnp
from jax.experimental import pallas as pl
from jax.experimental.pallas import tpu as pltpu


def _round_up(a, b):
    return ((a + b - 1) // b) * b


def _pad2(a, rows, cols):
    return jnp.pad(a, ((0, rows - a.shape[0]), (0, cols - a.shape[1])))


def _choose_tiling(n_nodes):
    """Pick padded N and (TM, TK) with TM | N, TK | N, TM <= N/2 (2 row steps)."""
    if n_nodes <= 512:
        N = _round_up(n_nodes, 128)
    elif n_nodes <= 2048:
        N = _round_up(n_nodes, 256)
    else:
        N = _round_up(n_nodes, 512)
    TM = None
    for cand in (512, 256, 128, 64):
        if N % cand == 0 and cand <= N // 2:
            TM = cand
            break
    if TM is None:
        TM = N
    TK = 128
    for cand in (2048, 1024, 512, 256, 128):
        if N % cand == 0:
            TK = cand
            break
    return N, TM, TK


# ---------------------------------------------------------------------------
# Pass 1:  G = (relu((adj @ XW1) + b1) * LW1) @ W4      with XW1 = x @ W1
# grid = (N//TM, N//TK); axis 1 is the adj-column reduction (innermost).
# ---------------------------------------------------------------------------
def _pass1_kernel(adj_ref, xw1_ref, b1_ref, lw1_ref, w4_ref, g_ref, acc_ref):
    k = pl.program_id(1)

    @pl.when(k == 0)
    def _():
        acc_ref[...] = jnp.zeros_like(acc_ref)

    # adj @ XW1 : bf16 operands on the MXU, f32 accumulation.  Accumulator is
    # only (TM, H) wide because x @ W1 was hoisted out of the reduction.
    acc_ref[...] += jnp.dot(adj_ref[...], xw1_ref[...],
                            preferred_element_type=jnp.float32)

    @pl.when(k == pl.num_programs(1) - 1)
    def _():
        h = acc_ref[...] + b1_ref[...]            # gc1 bias
        h = jnp.maximum(h, 0.0)                   # ReLU
        # dropout: inference semantics (identity)
        # TODO(synk): training-mode dropout would need pltpu.prng_* masking.
        h = h * lw1_ref[...]                      # learnable_weight1
        # Fuse gc4's feature transform so pass 2 only needs adj @ G.
        # bf16 epilogue dot (result is stored as bf16 anyway; ~3x less MXU
        # time on v5e's multi-pass f32 matmul path).
        g = jnp.dot(h.astype(jnp.bfloat16), w4_ref[...],
                    preferred_element_type=jnp.float32)
        g_ref[...] = g.astype(g_ref.dtype)


# ---------------------------------------------------------------------------
# Pass 2:  out = log_softmax((adj @ G + b4) * LW2)   (masked over nclass lanes)
# ---------------------------------------------------------------------------
def _pass2_kernel(adj_ref, g_ref, b4_ref, lw2_ref, out_ref, acc_ref, *, nclass):
    k = pl.program_id(1)

    @pl.when(k == 0)
    def _():
        acc_ref[...] = jnp.zeros_like(acc_ref)

    acc_ref[...] += jnp.dot(adj_ref[...], g_ref[...],
                            preferred_element_type=jnp.float32)

    @pl.when(k == pl.num_programs(1) - 1)
    def _():
        z = (acc_ref[...] + b4_ref[...]) * lw2_ref[...]
        # masked log_softmax over axis=1 (only the first `nclass` lanes valid)
        col = jax.lax.broadcasted_iota(jnp.int32, z.shape, 1)
        valid = col < nclass
        m = jnp.max(jnp.where(valid, z, -jnp.inf), axis=1, keepdims=True)
        e = jnp.where(valid, jnp.exp(z - m), 0.0)
        lse = jnp.log(jnp.sum(e, axis=1, keepdims=True)) + m
        out_ref[...] = (z - lse).astype(out_ref.dtype)


def lwgcn_forward(x, adj, w1, b1, lw1, w4, b4, lw2):
    n_nodes, nfeat = x.shape
    nhid = w1.shape[1]
    nclass = w4.shape[1]

    # Lane-align feature dims so every store is an unmasked 128-lane vst.
    H = _round_up(nhid, 128)
    C = _round_up(nclass, 128)

    N, TM, TK = _choose_tiling(n_nodes)

    f32, bf16 = jnp.float32, jnp.bfloat16

    # Tiny prologue in plain XLA: XW1 = x @ W1  (N x F x H flops, negligible
    # next to the N^2 adj matmuls).  Done in f32, fed to the kernel in bf16.
    xw1 = (x.astype(f32) @ w1.astype(f32))               # [n_nodes, nhid]

    adjp = _pad2(adj, N, N).astype(bf16)                  # bf16 halves adj HBM traffic
    xw1p = _pad2(xw1, N, H).astype(bf16)
    b1p = _pad2(b1.reshape(1, -1), 1, H).astype(f32)
    lw1p = _pad2(lw1, N, H).astype(f32)
    w4p = _pad2(w4, H, C).astype(bf16)                    # bf16 epilogue dot
    b4p = _pad2(b4.reshape(1, -1), 1, C).astype(f32)
    lw2p = _pad2(lw2, N, C).astype(f32)

    grid = (N // TM, N // TK)
    cparams = pltpu.CompilerParams(
        dimension_semantics=("parallel", "arbitrary"),
        # Per-step VMEM is ~6 MiB at TM=512/TK=2048; 40 MiB leaves headroom
        # and stays under v7x's 64 MiB physical VMEM (v5e/v6e have 128 MiB).
        vmem_limit_bytes=40 * 1024 * 1024,
    )

    # ---- pass 1: G = (relu(adj @ XW1 + b1) * LW1) @ W4 ----
    g = pl.pallas_call(
        _pass1_kernel,
        out_shape=jax.ShapeDtypeStruct((N, C), bf16),
        grid_spec=pltpu.PrefetchScalarGridSpec(
            num_scalar_prefetch=0,
            grid=grid,
            in_specs=[
                pl.BlockSpec((TM, TK), lambda i, k: (i, k)),   # adj row/col tile
                pl.BlockSpec((TK, H), lambda i, k: (k, 0)),    # XW1 col tile
                pl.BlockSpec((1, H), lambda i, k: (0, 0)),     # b1  (k-invariant)
                pl.BlockSpec((TM, H), lambda i, k: (i, 0)),    # LW1 (row tile)
                pl.BlockSpec((H, C), lambda i, k: (0, 0)),     # W4  (k-invariant)
            ],
            out_specs=pl.BlockSpec((TM, C), lambda i, k: (i, 0)),
            scratch_shapes=[pltpu.VMEM((TM, H), jnp.float32)],
        ),
        compiler_params=cparams,
    )(adjp, xw1p, b1p, lw1p, w4p)

    # ---- pass 2: out = log_softmax((adj @ G + b4) * LW2) ----
    out = pl.pallas_call(
        functools.partial(_pass2_kernel, nclass=nclass),
        out_shape=jax.ShapeDtypeStruct((N, C), f32),
        grid_spec=pltpu.PrefetchScalarGridSpec(
            num_scalar_prefetch=0,
            grid=grid,
            in_specs=[
                pl.BlockSpec((TM, TK), lambda i, k: (i, k)),   # adj
                pl.BlockSpec((TK, C), lambda i, k: (k, 0)),    # G
                pl.BlockSpec((1, C), lambda i, k: (0, 0)),     # b4  (k-invariant)
                pl.BlockSpec((TM, C), lambda i, k: (i, 0)),    # LW2 (row tile)
            ],
            out_specs=pl.BlockSpec((TM, C), lambda i, k: (i, 0)),
            scratch_shapes=[pltpu.VMEM((TM, C), jnp.float32)],
        ),
        compiler_params=cparams,
    )(adjp, g, b4p, lw2p)

    return out[:n_nodes, :nclass]


def reference_forward(x, adj, w1, b1, lw1, w4, b4, lw2):
    h = jnp.maximum(adj @ (x @ w1) + b1, 0.0)
    h = h * lw1
    z = adj @ (h @ w4) + b4
    z = z * lw2
    return jax.nn.log_softmax(z, axis=1)


if __name__ == "__main__":
    # Small shapes consistent with the module:
    nNodes, nfeat, nhid, nclass = 8, 16, 32, 8

    key = jax.random.PRNGKey(0)
    k = jax.random.split(key, 8)

    x = jax.random.normal(k[0], (nNodes, nfeat), dtype=jnp.float32)
    adj_raw = jax.random.uniform(k[1], (nNodes, nNodes), dtype=jnp.float32)
    adj = adj_raw / jnp.sum(adj_raw, axis=1, keepdims=True)  # row-normalized adjacency

    # GraphConvolution parameters (shapes per standard pygcn layer)
    w1 = jax.random.normal(k[2], (nfeat, nhid), dtype=jnp.float32) * 0.1
    b1 = jax.random.normal(k[3], (nhid,), dtype=jnp.float32) * 0.1
    w4 = jax.random.normal(k[4], (nhid, nclass), dtype=jnp.float32) * 0.1
    b4 = jax.random.normal(k[5], (nclass,), dtype=jnp.float32) * 0.1

    # learnable_weight1/2 have shapes (nNodes, nhid) / (nNodes, nclass).
    # (__init__ zeros them; use deterministic non-zero values so output is non-degenerate.)
    lw1 = jax.random.normal(k[6], (nNodes, nhid), dtype=jnp.float32) * 0.1 + 1.0
    lw2 = jax.random.normal(k[7], (nNodes, nclass), dtype=jnp.float32) * 0.1 + 1.0

    out = lwgcn_forward(x, adj, w1, b1, lw1, w4, b4, lw2)
    jax.block_until_ready(out)

    ref = reference_forward(x, adj, w1, b1, lw1, w4, b4, lw2)
    assert out.shape == (nNodes, nclass)
    # Tolerance relaxed vs the pure-f32 reference because adj/XW1/G/W4 run on
    # the MXU in bfloat16 (f32 accumulation).
    assert jnp.allclose(out, ref, atol=2e-2, rtol=2e-2), (
        f"mismatch vs. JAX reference, max abs diff {jnp.max(jnp.abs(out - ref))}")

    print("KERNEL_OK")
</pallas_src>

<mosaic_0001>
module attributes {stable_mosaic.version = 11 : i64} {
  func.func @_pass1_kernel(%arg0: i32, %arg1: i32, %arg2: memref<64x128xbf16, #tpu.memory_space<vmem>>, %arg3: memref<128x128xbf16, #tpu.memory_space<vmem>>, %arg4: memref<1x128xf32, #tpu.memory_space<vmem>>, %arg5: memref<64x128xf32, #tpu.memory_space<vmem>>, %arg6: memref<128x128xbf16, #tpu.memory_space<vmem>>, %arg7: memref<64x128xbf16, #tpu.memory_space<vmem>>, %arg8: memref<64x128xf32, #tpu.memory_space<vmem>>) attributes {dimension_semantics = [#tpu.dimension_semantics<parallel>, #tpu.dimension_semantics<arbitrary>], iteration_bounds = array<i64: 2, 1>, scalar_prefetch = 0 : i64, scratch_operands = 1 : i64, tpu.core_type = #tpu.core_type<tc>, window_params = [{transform_indices = @transform_0, window_bounds = array<i64: 64, 128>}, {transform_indices = @transform_1, window_bounds = array<i64: 128, 128>}, {pipeline_mode = #tpu.pipeline_mode<synchronous>, transform_indices = @transform_2, window_bounds = array<i64: 1, 128>}, {transform_indices = @transform_3, window_bounds = array<i64: 64, 128>}, {pipeline_mode = #tpu.pipeline_mode<synchronous>, transform_indices = @transform_4, window_bounds = array<i64: 128, 128>}, {transform_indices = @transform_5, window_bounds = array<i64: 64, 128>}]} {
    %c0_i32 = arith.constant 0 : i32
    %0 = arith.cmpi eq, %arg1, %c0_i32 : i32
    %1 = arith.extui %0 : i1 to i32
    %c0_i32_0 = arith.constant 0 : i32
    %2 = arith.cmpi ne, %1, %c0_i32_0 : i32
    scf.if %2 {
      %cst_10 = arith.constant 0.000000e+00 : f32
      %12 = vector.broadcast %cst_10 : f32 to vector<64x128xf32>
      %c0_11 = arith.constant 0 : index
      %c0_12 = arith.constant 0 : index
      %13 = vector.load %arg8[%c0_11, %c0_12] : memref<64x128xf32, #tpu.memory_space<vmem>>, vector<64x128xf32>
      tpu.vector_store %arg8[%c0_11, %c0_12], %12 {strides = array<i32>} : memref<64x128xf32, #tpu.memory_space<vmem>>, vector<64x128xf32>,
    } else {
    }
    %c0 = arith.constant 0 : index
    %c0_1 = arith.constant 0 : index
    %3 = vector.load %arg8[%c0, %c0_1] : memref<64x128xf32, #tpu.memory_space<vmem>>, vector<64x128xf32>
    %c0_2 = arith.constant 0 : index
    %c0_3 = arith.constant 0 : index
    %4 = vector.load %arg2[%c0_2, %c0_3] : memref<64x128xbf16, #tpu.memory_space<vmem>>, vector<64x128xbf16>
    %c0_4 = arith.constant 0 : index
    %c0_5 = arith.constant 0 : index
    %5 = vector.load %arg3[%c0_4, %c0_5] : memref<128x128xbf16, #tpu.memory_space<vmem>>, vector<128x128xbf16>
    %cst = arith.constant dense<0.000000e+00> : vector<64x128xf32>
    %6 = tpu.matmul %4, %5, %cst {dimension_numbers = #tpu.dot_dimension_numbers<[1], [0], [0], [1], [0, 0, 1, 1], [], []>} : vector<64x128xbf16>, vector<128x128xbf16>, vector<64x128xf32> -> vector<64x128xf32>
    %7 = arith.addf %3, %6 : vector<64x128xf32>
    %c0_6 = arith.constant 0 : index
    %c0_7 = arith.constant 0 : index
    %8 = vector.load %arg8[%c0_6, %c0_7] : memref<64x128xf32, #tpu.memory_space<vmem>>, vector<64x128xf32>
    tpu.vector_store %arg8[%c0_6, %c0_7], %7 {strides = array<i32>} : memref<64x128xf32, #tpu.memory_space<vmem>>, vector<64x128xf32>,
    %c0_i32_8 = arith.constant 0 : i32
    %9 = arith.cmpi eq, %arg1, %c0_i32_8 : i32
    %10 = arith.extui %9 : i1 to i32
    %c0_i32_9 = arith.constant 0 : i32
    %11 = arith.cmpi ne, %10, %c0_i32_9 : i32
    scf.if %11 {
      %c0_10 = arith.constant 0 : index
      %c0_11 = arith.constant 0 : index
      %12 = vector.load %arg8[%c0_10, %c0_11] : memref<64x128xf32, #tpu.memory_space<vmem>>, vector<64x128xf32>
      %c0_12 = arith.constant 0 : index
      %c0_13 = arith.constant 0 : index
      %13 = vector.load %arg4[%c0_12, %c0_13] : memref<1x128xf32, #tpu.memory_space<vmem>>, vector<1x128xf32>
      %14 = vector.broadcast %13 : vector<1x128xf32> to vector<64x128xf32>
      %15 = arith.addf %12, %14 : vector<64x128xf32>
      %cst_14 = arith.constant 0.000000e+00 : f32
      %16 = vector.broadcast %cst_14 : f32 to vector<64x128xf32>
      %17 = arith.maximumf %15, %16 : vector<64x128xf32>
      %c0_15 = arith.constant 0 : index
      %c0_16 = arith.constant 0 : index
      %18 = vector.load %arg5[%c0_15, %c0_16] : memref<64x128xf32, #tpu.memory_space<vmem>>, vector<64x128xf32>
      %19 = arith.mulf %17, %18 : vector<64x128xf32>
      %20 = arith.truncf %19 : vector<64x128xf32> to vector<64x128xbf16>
      %c0_17 = arith.constant 0 : index
      %c0_18 = arith.constant 0 : index
      %21 = vector.load %arg6[%c0_17, %c0_18] : memref<128x128xbf16, #tpu.memory_space<vmem>>, vector<128x128xbf16>
      %cst_19 = arith.constant dense<0.000000e+00> : vector<64x128xf32>
      %22 = tpu.matmul %20, %21, %cst_19 {dimension_numbers = #tpu.dot_dimension_numbers<[1], [0], [0], [1], [0, 0, 1, 1], [], []>} : vector<64x128xbf16>, vector<128x128xbf16>, vector<64x128xf32> -> vector<64x128xf32>
      %23 = arith.truncf %22 : vector<64x128xf32> to vector<64x128xbf16>
      %c0_20 = arith.constant 0 : index
      %c0_21 = arith.constant 0 : index
      %24 = vector.load %arg7[%c0_20, %c0_21] : memref<64x128xbf16, #tpu.memory_space<vmem>>, vector<64x128xbf16>
      tpu.vector_store %arg7[%c0_20, %c0_21], %23 {strides = array<i32>} : memref<64x128xbf16, #tpu.memory_space<vmem>>, vector<64x128xbf16>,
    } else {
    }
    return
  }
  func.func @transform_0(%arg0: i32, %arg1: i32) -> (i32, i32) {
    %c0_i32 = arith.constant 0 : i32
    return %arg0, %arg1 : i32, i32
  }
  func.func @transform_1(%arg0: i32, %arg1: i32) -> (i32, i32) {
    %c0_i32 = arith.constant 0 : i32
    %c0_i32_0 = arith.constant 0 : i32
    return %arg1, %c0_i32 : i32, i32
  }
  func.func @transform_2(%arg0: i32, %arg1: i32) -> (i32, i32) {
    %c0_i32 = arith.constant 0 : i32
    %c0_i32_0 = arith.constant 0 : i32
    %c0_i32_1 = arith.constant 0 : i32
    return %c0_i32, %c0_i32_0 : i32, i32
  }
  func.func @transform_3(%arg0: i32, %arg1: i32) -> (i32, i32) {
    %c0_i32 = arith.constant 0 : i32
    %c0_i32_0 = arith.constant 0 : i32
    return %arg0, %c0_i32 : i32, i32
  }
  func.func @transform_4(%arg0: i32, %arg1: i32) -> (i32, i32) {
    %c0_i32 = arith.constant 0 : i32
    %c0_i32_0 = arith.constant 0 : i32
    %c0_i32_1 = arith.constant 0 : i32
    return %c0_i32, %c0_i32_0 : i32, i32
  }
  func.func @transform_5(%arg0: i32, %arg1: i32) -> (i32, i32) {
    %c0_i32 = arith.constant 0 : i32
    %c0_i32_0 = arith.constant 0 : i32
    return %arg0, %c0_i32 : i32, i32
  }
}

</mosaic_0001>

<bundles_post_ra>
// kernel: tpu_custom_call.1
= control target key start
LH: loop header
LB: loop body
LE: loop exit
PB: predicated region body
PF: predicated region fallthrough
CT: control target
= control target key end

     0   :  { %s1738_s0 = inlined_call_operand.hbm [shape: bf16[128,128], index: 0, kind: input, shape index: {}]   ;;  %s1739_s1 = inlined_call_operand.hbm [shape: bf16[128,128], index: 1, kind: input, shape index: {}]   ;;  %s1740_s2 = inlined_call_operand.vmem [shape: f32[1,128], index: 2, kind: input, shape index: {}]   ;;  %s1741_s3 = inlined_call_operand.hbm [shape: f32[128,128], index: 3, kind: input, shape index: {}]   ;;  %s1742_s4 = inlined_call_operand.hbm [shape: bf16[128,128], index: 4, kind: input, shape index: {}]   ;;  %s1743_s5 = inlined_call_operand.hbm [shape: bf16[128,128], index: 5, kind: output, shape index: {}]  }
   0x1   :  { %1763 = sst [smem:[#allocation22_spill]] %s1738_s0 }
   0x2   :  { %1764 = sst [smem:[#allocation23_spill]] %s1739_s1 }
   0x3   :  { %1765 = sst [smem:[#allocation24_spill]] %s1743_s5 }
   0x4   :  { %10 = vsyncpa [#allocation4], 0 }
   0x5   :  { %12 = vsyncpa [#allocation4 + $0x1], 0 }
   0x6   :  { %13 = vsyncpa [#allocation7], 0 }
   0x7   :  { %14 = vsyncpa [#allocation5], 0 }
   0x8   :  { %16 = vsyncpa [#allocation5 + $0x1], 0  ;;  %s1420_s18 = smov 0   ;;  %s1422_s19 = smov 0  }
   0x9   :  { %s1424_s20 = smov 0   ;;  %s1426_s21 = smov 0  }
   0xa   :  { %s1428_s22 = smov 0   ;;  %s1430_s23 = smov 0  }
   0xb LB: > { %1766 = sst [smem:[#allocation16_spill]] %s1357_s18  ;;  %s1451_s24 = sadd.s32 4294967295, %s1377_s23   ;;  %s1377_s23 = sphi %s1430_s23, %s22_s23   ;;  %s1373_s22 = sphi %s1428_s22, %s1808_s22   ;;  %s1369_s21 = sphi %s1426_s21, %s1807_s21   ;;  %s1365_s20 = sphi %s1424_s20, %s1803_s20   ;;  %s1361_s19 = sphi %s1422_s19, %s1806_s19   ;;  %s1357_s18 = sphi %s1420_s18, %s1805_s18  }
   0xc   : > { %1767 = sst [smem:[#allocation17_spill]] %s1365_s20  ;;  %s896_s25 = sadd.s32 4294967294, %s1377_s23  }
   0xd   : > { %1768 = sst [smem:[#allocation18_spill]] %s1377_s23  ;;  %p56_p0 = scmp.ne.s32.totalorder %s1361_s19, %s1357_s18 }
   0xe   : > { %p1744_p1 = scmp.eq.s32.totalorder %s1451_s24, 0  ;;  %p180_p3 = scmp.eq.s32.totalorder %s896_s25, 1 }
   0xf   : > { %p897_p5 = scmp.ge.s32.totalorder %s1377_s23, 1  ;;  %p187_p7 = scmp.lt.s32.totalorder %s1377_s23, 3 }
  0x10   : > { %p1460_p4 = por %p1744_p1, %p56_p0  ;;  %p1465_p6 = por %p180_p3, %p56_p0 }
  0x11   : > { %p1470_p8 = pnand %p897_p5, %p187_p7  ;;  %s1379_s29 = smov [#allocation6]  }
  0x12   : > { %s1769_s26 = scalar_select %p1460_p4, 1, 0 }
  0x13   : > { %s1770_s27 = scalar_select %p1465_p6, 1, 0 }
  0x14   : > { %s1772_s28 = scalar_select %p1470_p8, 1, 0 }
  0x15   : > { %1771 = sst [smem:[#allocation19_spill]] %s1770_s27  ;;  %s202_s30 = sshll.u32 %s1379_s29, 4  ;;  %s203_s30 = int_to_ptr.vmem [resolvable:$true] %s202_s30 }
  0x16   : > { %p1067_p9 = pneg %p1470_p8  ;;  %s34_s7 = sadd.s32 1, %s1373_s22 }
  0x17   : > { %s1774_s1 = sld [smem:[#allocation23_spill]] }
  0x18   : > { %p1479_p11 = pnand %p1067_p9, %p1744_p1 }
  0x1a   : > { %p1752_p13 = pneg %p1479_p11 }
  0x1d   : > { %s1167_s10 = scalar_lea.hbm %s1774_s1, 1024 }
  0x1e   : > { %p1168_p12 = scmp.ne.s32.totalorder %s1774_s1, %s1167_s10  ;;  %p1174_p5 = scmp.lt.u32.totalorder %s1167_s10, %s1774_s1 }
  0x20   : > { %p1170_p0 = pnand %p1752_p13, %p1168_p12 }
  0x22   : > { %p1171_p3 = pneg %p1170_p0 }
  0x24   : > { %p1176_p7 = pnand %p1174_p5, %p1171_p3 }
  0x26   : > { %1179 = shalt.err (!%p1176_p7)
}
  0x27   : > { %s1180_s15 = scalar_lea.vmem %s203_s30, 1024  ;;  %p1188_p2 = scmp.lt.s32.totalorder %s203_s30, %s203_s30 }
  0x28   : > { %p1181_p9 = scmp.ne.s32.totalorder %s203_s30, %s1180_s15  ;;  %p1189_p6 = scmp.lt.s32.totalorder %s1180_s15, %s1180_s15 }
  0x2a   : > { %p1183_p10 = pnand %p1181_p9, %p1752_p13  ;;  %p1190_p4 = por %p1189_p6, %p1188_p2 }
  0x2c   : > { %p1184_p1 = pneg %p1183_p10 }
  0x2e   : > { %p1191_p8 = pnand %p1190_p4, %p1184_p1 }
  0x30   : > { %1194 = shalt.err (!%p1191_p8)
}
  0x31   : > { %s1747_s16 = smov 64   ;;  %s1749_s17 = smov 4  }
  0x32   : > { %1070 = dma.hbm_to_vmem [thread:$0]  (!%p1479_p11), %s1774_s1, 1024, %s203_s30, [#allocation7], %s1747_s16, %s1747_s16, %s1749_s17  }
  0x33   : > { %p36_p1 = scmp.ge.s32.totalorder %s34_s7, 2  ;;  %s43_s8 = sadd.s32 1, %s1365_s20 }
  0x34   : > { %p50_p2 = scmp.ne.s32.totalorder %s1365_s20, %s1361_s19  ;;  %p51_p4 = scmp.eq.s32.totalorder %s1377_s23, 0 }
  0x35   : > { %s1810_s7 = smov (%p36_p1, %s34_s7), 0  ;;  %p1777_p8 = scmp.eq.s32.totalorder %s1451_s24, 1 }
  0x36   : > { %1775 = sst [smem:[#allocation20_spill]] %s1810_s7  ;;  %p1515_p6 = por %p51_p4, %p50_p2 }
  0x37   : > { %p1521_p10 = por %p1777_p8, %p50_p2  ;;  %s38_s11 = ssub.s32 %s1373_s22, %s1810_s7 }
  0x38   : > { %p1087_p12 = scmp.lt.s32.totalorder %s1377_s23, 2  ;;  %p41_p0 = scmp.eq.s32.totalorder %s38_s11, 0 }
  0x39   : > { %s1778_s10 = scalar_select %p1521_p10, 1, 0 }
  0x3a   : > { %s232_s30 = sand.u32 1, %s1377_s23   ;;  %s234_s12 = sand.u32 1, %s1365_s20  }
  0x3b   : > { %s1531_s13 = scalar_select %p41_p0, %s1365_s20, %s43_s8  }
  0x3c   : > { %s901_s14 = sshll.u32 %s234_s12, 5  ;;  %s947_s15 = sshll.u32 %s1373_s22, 9 }
  0x3d   : > { %1779 = sst [smem:[#allocation21_spill]] %s1531_s13  ;;  %s1780_s0 = sld [smem:[#allocation22_spill]] }
  0x3e   : > { %s236_s17 = scalar_lea.vmem [#allocation3], %s901_s14  ;;  %p1541_p3 = pnand %p1087_p12, %p1515_p6 }
  0x3f   : > { %s244_s1 = sshll.u32 %s236_s17, 4  ;;  %s1547_s8 = sshll.u32 %s234_s12, 6  ;;  %s1545_s1 = int_to_ptr.vmem [resolvable:$true] %s244_s1 }
  0x40   : > { %s1781_s11 = scalar_select %p1541_p3, 1, 0 }
  0x41   : > { %s1549_s25 = scalar_lea.sflag [#allocation4], %s232_s30  ;;  %p1760_p7 = pneg %p1541_p3 }
  0x43   : > { %s1537_s16 = scalar_lea.hbm %s1780_s0, %s947_s15  ;;  %s1200_s14 = scalar_lea.hbm %s1780_s0, 1024 }
  0x44   : > { %s1195_s15 = scalar_lea.hbm %s1537_s16, 512  ;;  %p1201_p2 = scmp.lt.u32.totalorder %s1537_s16, %s1780_s0 }
  0x45   : > { %p1196_p5 = scmp.ne.s32.totalorder %s1537_s16, %s1195_s15  ;;  %p1202_p4 = scmp.lt.u32.totalorder %s1200_s14, %s1195_s15 }
  0x46   : > { %p1204_p8 = scmp.lt.u32.totalorder %s1195_s15, %s1537_s16 }
  0x47   : > { %p1198_p9 = pnand %p1760_p7, %p1196_p5  ;;  %p1203_p6 = por %p1202_p4, %p1201_p2 }
  0x49   : > { %p1199_p1 = pneg %p1198_p9  ;;  %p1205_p12 = por %p1204_p8, %p1203_p6 }
  0x4b   : > { %p1206_p0 = pnand %p1205_p12, %p1199_p1 }
  0x4d   : > { %1209 = shalt.err (!%p1206_p0)
}
  0x4e   : > { %s1210_s30 = scalar_lea.vmem %s1545_s1, 512  ;;  %s1382_s12 = smov [#allocation3]  }
  0x4f   : > { %p1211_p5 = scmp.ne.s32.totalorder %s1545_s1, %s1210_s30  ;;  %s1215_s17 = sshll.u32 %s1382_s12, 4  ;;  %s1216_s17 = int_to_ptr.vmem [resolvable:$false] %s1215_s17 }
  0x50   : > { %s1217_s7 = scalar_lea.vmem %s1216_s17, 1024  ;;  %p1218_p10 = scmp.lt.s32.totalorder %s1545_s1, %s1216_s17 }
  0x51   : > { %p1213_p9 = pnand %p1211_p5, %p1760_p7  ;;  %p1219_p2 = scmp.lt.s32.totalorder %s1217_s7, %s1210_s30 }
  0x53   : > { %p1214_p13 = pneg %p1213_p9  ;;  %p1220_p4 = por %p1219_p2, %p1218_p10 }
  0x55   : > { %p1221_p6 = pnand %p1220_p4, %p1214_p13 }
  0x57   : > { %1224 = shalt.err (!%p1221_p6)
}
  0x58   : > { %s1782_s15 = smov 4   ;;  %s1783_s9 = smov 64  }
  0x59   : > { %1077 = dma.hbm_to_vmem [thread:$0]  (!%p1541_p3), %s1537_s16, 512, %s1545_s1, %s1549_s25, %s1783_s9, %s1783_s9, %s1782_s15  }
  0x5a   : > { %s258_s14 = scalar_lea.vmem [#allocation8], %s1547_s8  ;;  %s1383_s12 = smov [#allocation9]  }
  0x5b   : > { %s265_s29 = sshll.u32 %s258_s14, 4  ;;  %s218_s17 = sshll.u32 %s1383_s12, 4  ;;  %s219_s17 = int_to_ptr.vmem [resolvable:$true] %s218_s17  ;;  %s1610_s29 = int_to_ptr.vmem [resolvable:$true] %s265_s29 }
  0x5c   : > { %s948_s30 = sshll.u32 %s1373_s22, 10  ;;  %s1225_s27 = scalar_lea.hbm %s1742_s4, 1024 }
  0x5d   : > { %s1585_s13 = scalar_lea.hbm %s1741_s3, %s948_s30  ;;  %p1226_p13 = scmp.ne.s32.totalorder %s1742_s4, %s1225_s27 }
  0x5e   : > { %p1784_p10 = pneg %p1479_p11  ;;  %p1232_p12 = scmp.lt.u32.totalorder %s1225_s27, %s1742_s4 }
  0x60   : > { %p1228_p1 = pnand %p1226_p13, %p1784_p10 }
  0x62   : > { %p1229_p8 = pneg %p1228_p1 }
  0x64   : > { %p1234_p0 = pnand %p1232_p12, %p1229_p8 }
  0x66   : > { %1237 = shalt.err (!%p1234_p0)
}
  0x67   : > { %s1238_s0 = scalar_lea.vmem %s219_s17, 1024  ;;  %p1785_p9 = pmov %p1784_p10 }
  0x68   : > { %p1239_p5 = scmp.ne.s32.totalorder %s219_s17, %s1238_s0  ;;  %p1246_p6 = scmp.lt.s32.totalorder %s219_s17, %s219_s17 }
  0x69   : > { %p1247_p7 = scmp.lt.s32.totalorder %s1238_s0, %s1238_s0 }
  0x6a   : > { %p1241_p2 = pnand %p1239_p5, %p1785_p9 }
  0x6b   : > { %p1248_p3 = por %p1247_p7, %p1246_p6 }
  0x6c   : > { %p1242_p4 = pneg %p1241_p2 }
  0x6e   : > { %p1249_p10 = pnand %p1248_p3, %p1242_p4 }
  0x70   : > { %1252 = shalt.err (!%p1249_p10)
}
  0x71   : > { %1073 = dma.hbm_to_vmem [thread:$0]  (!%p1479_p11), %s1742_s4, 1024, %s219_s17, [#allocation7], %s1783_s9, %s1783_s9, %s1782_s15  }
  0x72   : > { %s1253_s20 = scalar_lea.hbm %s1585_s13, 1024  ;;  %p1786_p3 = scmp.ne.s32.totalorder %s1781_s11, 0 }
  0x73   : > { %p1254_p7 = scmp.ne.s32.totalorder %s1585_s13, %s1253_s20  ;;  %s1258_s6 = scalar_lea.hbm %s1741_s3, 2048 }
  0x74   : > { %p1787_p13 = pneg %p1786_p3  ;;  %p1259_p12 = scmp.lt.u32.totalorder %s1585_s13, %s1741_s3 }
  0x75   : > { %p1260_p0 = scmp.lt.u32.totalorder %s1258_s6, %s1253_s20  ;;  %p1262_p9 = scmp.lt.u32.totalorder %s1253_s20, %s1585_s13 }
  0x76   : > { %p1256_p1 = pnand %p1254_p7, %p1787_p13 }
  0x77   : > { %p1261_p5 = por %p1260_p0, %p1259_p12 }
  0x78   : > { %p1257_p8 = pneg %p1256_p1 }
  0x79   : > { %p1263_p11 = por %p1262_p9, %p1261_p5 }
  0x7b   : > { %p1264_p2 = pnand %p1263_p11, %p1257_p8 }
  0x7d   : > { %1267 = shalt.err (!%p1264_p2)
}
  0x7e   : > { %s1268_s15 = scalar_lea.vmem %s1610_s29, 1024  ;;  %p1788_p6 = pmov %p1787_p13 }
  0x7f   : > { %p1269_p4 = scmp.ne.s32.totalorder %s1610_s29, %s1268_s15  ;;  %s1384_s9 = smov [#allocation8]  }
  0x80   : > { %s1273_s12 = sshll.u32 %s1384_s9, 4  ;;  %s1274_s12 = int_to_ptr.vmem [resolvable:$false] %s1273_s12 }
  0x81   : > { %p1271_p10 = pnand %p1269_p4, %p1788_p6  ;;  %s1275_s17 = scalar_lea.vmem %s1274_s12, 2048 }
  0x82   : > { %p1276_p13 = scmp.lt.s32.totalorder %s1610_s29, %s1274_s12  ;;  %p1277_p1 = scmp.lt.s32.totalorder %s1275_s17, %s1268_s15 }
  0x83   : > { %p1272_p7 = pneg %p1271_p10 }
  0x84   : > { %p1278_p12 = por %p1277_p1, %p1276_p13 }
  0x86   : > { %p1279_p0 = pnand %p1278_p12, %p1272_p7 }
  0x88   : > { %1282 = shalt.err (!%p1279_p0)
}
  0x89   : > { %s1385_s30 = smov 128   ;;  %s1386_s7 = smov 8  }
  0x8a   : > { %1080 = dma.hbm_to_vmem [thread:$0]  (!%p1786_p3), %s1585_s13, 1024, %s1610_s29, %s1549_s25, %s1385_s30, %s1385_s30, %s1386_s7  }
  0x8b   : > { %p1789_p8 = scmp.ne.s32.totalorder %s1772_s28, 0 }
  0x8c   : > { %s279_s1 = sand.u32 (!%p1789_p8), 1, %s1451_s24   ;;  %s1640_s16 = sand.u32 (!%p1789_p8), 1, %s1361_s19  }
  0x8d   : > { %277 = sbr.rel (%p1789_p8) target bundleno = 655 (0x28f), region = 40  ;;  %s908_s0 = sshll.u32 (!%p1789_p8), %s1640_s16, 5 }
  0x8e   : > { %s280_s5 = scalar_lea.sflag (!%p1789_p8), [#allocation4], %s279_s1  ;;  %s1645_s18 = scalar_lea.vmem (!%p1789_p8), [#allocation3], %s908_s0 }
  0x8f   : > { %p1790_p5 = scmp.ne.s32.totalorder (!%p1789_p8), %s1769_s26, 0 }
  0x94   : > { %1336 = dma.done.wait (%p1790_p5), %s280_s5, 512  }
  0x95   : > { %1338 = vsyncadd (%p1790_p5), %s280_s5, 4294966784  ;;  %p1791_p3 = scmp.eq.s32.totalorder %s1451_s24, 0 }
  0x97   : > { %1340 = dma.done.wait (%p1791_p3), [#allocation7], 1024   ;;  %p1792_p9 = pmov %p1791_p3 }
  0x98   : > { %s910_s28 = sshll.u32 %s1640_s16, 6 }
  0x99   : > { %1342 = vsyncadd (%p1792_p9), [#allocation7], 4294966272  ;;  %s1656_s13 = scalar_lea.vmem [#allocation8], %s910_s28 }
  0x9a   : > { %1344 = dma.done.wait (%p1790_p5), %s280_s5, 1024  }
  0x9b   : > { %1346 = vsyncadd (%p1790_p5), %s280_s5, 4294966272  ;;  %p1793_p11 = pmov %p1791_p3 }
  0x9c   : > { %p1794_p2 = pmov %p1791_p3 }
  0x9d   : > { %1348 = dma.done.wait (%p1793_p11), [#allocation7], 1024  }
  0x9e   : > { %1350 = vsyncadd (%p1794_p2), [#allocation7], 4294966272  ;;  %v1147_v0 = vld [vmem:[#allocation6] sm:$0xff]   ;;  %v1148_v1 = vld [vmem:[#allocation6 + $0x8] sm:$0xff]   ;;  %s331_s11 = scalar_lea.vmem [#allocation10], %s908_s0  ;;  %s957_s29 = sshll.u32 %s1369_s21, 9 }
  0x9f   : > { %1005 = vmatprep.subr.bf16.mxu0 %v1147_v0  ;;  %v1149_v2 = vld [vmem:[#allocation6 + $0x10] sm:$0xff]   ;;  %v1150_v3 = vld [vmem:[#allocation6 + $0x18] sm:$0xff]   ;;  %v1155_v4 = vld [vmem:[%s1645_s18] sm:$0xff]   ;;  %s771_s25 = sshll.u32 %s331_s11, 4  ;;  %s1795_s27 = sld [smem:[#allocation24_spill]]  ;;  %s1684_s25 = int_to_ptr.vmem [resolvable:$true] %s771_s25 }
  0xa0   : > { %1006 = vmatpush3.bf16.msra.mxu0 %v1147_v0  ;;  %1021 = vmatprep.mubr.bf16.mxu0 %v1155_v4  ;;  %v1151_v5 = vld [vmem:[#allocation6 + $0x20] sm:$0xff]   ;;  %v1160_v7 = vld [vmem:[#allocation9 + $0x8] sm:$0xff]   ;;  %v1161_v9 = vld [vmem:[#allocation9 + $0x10] sm:$0xff]   ;;  %s758_s8 = scalar_lea.sflag [#allocation5], %s1640_s16  ;;  %s1283_s14 = scalar_lea.vmem %s1684_s25, 512 }
  0xa1   : > { %1007 = vmatprep.subr.bf16.mxu0 %v1148_v1  ;;  %v1159_v6 = vld [vmem:[#allocation9] sm:$0xff]   ;;  %v1152_v8 = vld [vmem:[#allocation6 + $0x28] sm:$0xff]   ;;  %v1153_v10 = vld [vmem:[#allocation6 + $0x30] sm:$0xff]   ;;  %p1284_p4 = scmp.ne.s32.totalorder %s1684_s25, %s1283_s14  ;;  %p1796_p6 = scmp.ne.s32.totalorder %s1778_s10, 0 }
  0xa2   : > { %1029 = vmatprep.subr.bf16.mxu1 %v1159_v6  ;;  %v1162_v11 = vld [vmem:[#allocation9 + $0x18] sm:$0xff]   ;;  %v1163_v13 = vld [vmem:[#allocation9 + $0x20] sm:$0xff]   ;;  %v1156_v14 = vld [vmem:[%s1645_s18 + $0x8] sm:$0xff]   ;;  %s1387_s21 = smov [#allocation10]  }
  0xa3   : > { %1030 = vmatpush3.bf16.msra.mxu1 %v1159_v6  ;;  %v1154_v12 = vld [vmem:[#allocation6 + $0x38] sm:$0xff]   ;;  %v1157_v15 = vld [vmem:[%s1645_s18 + $0x10] sm:$0xff]   ;;  %v1164_v17 = vld [vmem:[#allocation9 + $0x28] sm:$0xff]   ;;  %p1285_p10 = pnand %p1284_p4, %p1796_p6  ;;  %s1287_s15 = sshll.u32 %s1387_s21, 4  ;;  %s1288_s15 = int_to_ptr.vmem [resolvable:$false] %s1287_s15 }
  0xa4   : > { %1008 = vmatpush3.bf16.msra.mxu0 %v1148_v1  ;;  %1031 = vmatprep.subr.bf16.mxu1 %v1160_v7  ;;  %v1158_v16 = vld [vmem:[%s1645_s18 + $0x18] sm:$0xff]   ;;  %v1165_v18 = vld [vmem:[#allocation9 + $0x30] sm:$0xff]   ;;  %v925_v20 = vld [vmem:[%s1740_s2] ss:$0 sm:$0xff]  ;;  %s1289_s9 = scalar_lea.vmem %s1288_s15, 1024  ;;  %p1290_p13 = scmp.lt.s32.totalorder %s1684_s25, %s1288_s15 }
  0xa5   : > { %1009 = vmatprep.subr.bf16.mxu0 %v1149_v2  ;;  %v1166_v19 = vld [vmem:[#allocation9 + $0x38] sm:$0xff]   ;;  %v570_v29 = vld [vmem:[%s1656_s13 + $0x10] sm:$0xff]  ;;  %v568_v34 = vld [vmem:[%s1656_s13] sm:$0xff]  ;;  %s1689_s6 = scalar_lea.hbm %s1795_s27, %s957_s29  ;;  %p1286_p7 = pneg %p1285_p10 }
  0xa6   : > { %v571_v31 = vld [vmem:[%s1656_s13 + $0x18] sm:$0xff]  ;;  %v569_v35 = vld [vmem:[%s1656_s13 + $0x8] sm:$0xff]  ;;  %v574_v51 = vld [vmem:[%s1656_s13 + $0x30] sm:$0xff]  ;;  %p1291_p1 = scmp.lt.s32.totalorder %s1289_s9, %s1283_s14 }
  0xa7   : > { %1032 = vmatpush3.bf16.msra.mxu1 %v1160_v7  ;;  %v575_v53 = vld [vmem:[%s1656_s13 + $0x38] sm:$0xff]  ;;  %v572_v55 = vld [vmem:[%s1656_s13 + $0x20] sm:$0xff]  ;;  %v573_v57 = vld [vmem:[%s1656_s13 + $0x28] sm:$0xff] }
  0xa8   : > { %1010 = vmatpush3.bf16.msra.mxu0 %v1149_v2  ;;  %1033 = vmatprep.subr.bf16.mxu1 %v1161_v9  ;;  %p1292_p12 = por %p1291_p1, %p1290_p13 }
  0xa9   : > { %1011 = vmatprep.subr.bf16.mxu0 %v1150_v3 }
  0xaa   : > { %p1293_p0 = pnand %p1292_p12, %p1286_p7 }
  0xab   : > { %1034 = vmatpush3.bf16.msra.mxu1 %v1161_v9 }
  0xac   : > { %1012 = vmatpush3.bf16.msra.mxu0 %v1150_v3  ;;  %1035 = vmatprep.subr.bf16.mxu1 %v1162_v11 }
  0xad   : > { %1013 = vmatprep.subr.bf16.mxu0 %v1151_v5 }
  0xaf   : > { %1036 = vmatpush3.bf16.msra.mxu1 %v1162_v11 }
  0xb0   : > { %1014 = vmatpush3.bf16.msra.mxu0 %v1151_v5  ;;  %1037 = vmatprep.subr.bf16.mxu1 %v1163_v13 }
  0xb1   : > { %1015 = vmatprep.subr.bf16.mxu0 %v1152_v8 }
  0xb3   : > { %1038 = vmatpush3.bf16.msra.mxu1 %v1163_v13 }
  0xb4   : > { %1016 = vmatpush3.bf16.msra.mxu0 %v1152_v8  ;;  %1039 = vmatprep.subr.bf16.mxu1 %v1164_v17 }
  0xb5   : > { %1017 = vmatprep.subr.bf16.mxu0 %v1153_v10 }
  0xb7   : > { %1040 = vmatpush3.bf16.msra.mxu1 %v1164_v17 }
  0xb8   : > { %1018 = vmatpush3.bf16.msra.mxu0 %v1153_v10  ;;  %1041 = vmatprep.subr.bf16.mxu1 %v1165_v18 }
  0xb9   : > { %1019 = vmatprep.subr.bf16.mxu0 %v1154_v12 }
  0xbb   : > { %1042 = vmatpush3.bf16.msra.mxu1 %v1165_v18 }
  0xbc   : > { %1020 = vmatpush3.bf16.msra.mxu0 %v1154_v12  ;;  %1043 = vmatprep.subr.bf16.mxu1 %v1166_v19 }
  0xbf   : > { %1022 = vmatmul.mubr.bf16.vlgmr.msra.gmra.mrb[0].mxu0 %v1156_v14  ;;  %1044 = vmatpush3.bf16.msra.mxu1 %v1166_v19 }
  0xc0   : > { %1025 = vmatprep.mubr.bf16.mxu0 %v1157_v15 }
  0xc7   : > { %1026 = vmatmul.mubr.bf16.gmra.mrb[4].mxu0 %v1158_v16 }
 0x192   : > { %v1023_v21 = vpop.f32.mrb[0].mxu0 }
 0x193   : > { %v554_v22 = vadd.f32 %v1023_v21, %v925_v20  ;;  %v487_v23 = vpop.f32.mrb[1].mxu0 }
 0x194   : > { %v552_v24 = vadd.f32 %v925_v20, %v487_v23  ;;  %v1024_v25 = vpop.f32.mrb[2].mxu0 }
 0x195   : > { %v562_v26 = vmax.f32 %v554_v22, 0.0  ;;  %v555_v27 = vadd.f32 %v1024_v25, %v925_v20  ;;  %v490_v28 = vpop.f32.mrb[3].mxu0 }
 0x196   : > { %v560_v30 = vmax.f32 %v552_v24, 0.0  ;;  %v553_v32 = vadd.f32 %v925_v20, %v490_v28 }
 0x197   : > { %v563_v33 = vmax.f32 %v555_v27, 0.0  ;;  %v578_v37 = vmul.f32 %v570_v29, %v562_v26 }
 0x198   : > { %v561_v36 = vmax.f32 %v553_v32, 0.0  ;;  %v576_v40 = vmul.f32 %v568_v34, %v560_v30 }
 0x199   : > { %v579_v38 = vmul.f32 %v571_v31, %v563_v33 }
 0x19a   : > { %v1027_v39 = vpop.f32.mrb[4].mxu0  ;;  %v577_v41 = vmul.f32 %v569_v35, %v561_v36 }
 0x19b   : > { %v558_v42 = vadd.f32 %v1027_v39, %v925_v20  ;;  %v503_v43 = vpop.f32.mrb[5].mxu0  ;;  %v585_v44 = vpack.c.bf16 %v579_v38, %v578_v37 }
 0x19c   : > { %v556_v45 = vadd.f32 %v925_v20, %v503_v43  ;;  %v1028_v46 = vpop.f32.mrb[6].mxu0  ;;  %v584_v47 = vpack.c.bf16 %v577_v41, %v576_v40 }
 0x19d   : > { %v566_v48 = vmax.f32 %v558_v42, 0.0  ;;  %v559_v49 = vadd.f32 %v1028_v46, %v925_v20  ;;  %v506_v50 = vpop.f32.mrb[7].mxu0 }
 0x19e   : > { %v564_v52 = vmax.f32 %v556_v45, 0.0  ;;  %v557_v54 = vadd.f32 %v925_v20, %v506_v50  ;;  %1045 = vmatprep.mubr.bf16.mxu1 %v584_v47 }
 0x19f   : > { %v567_v56 = vmax.f32 %v559_v49, 0.0  ;;  %1046 = vmatmul.mubr.bf16.vlgmr.msra.gmra.mrb[0].mxu1 %v585_v44  ;;  %v582_v59 = vmul.f32 %v574_v51, %v566_v48 }
 0x1a0   : > { %v565_v58 = vmax.f32 %v557_v54, 0.0  ;;  %v580_v61 = vmul.f32 %v572_v55, %v564_v52 }
 0x1a1   : > { %v583_v60 = vmul.f32 %v575_v53, %v567_v56 }
 0x1a2   : > { %v581_v62 = vmul.f32 %v573_v57, %v565_v58 }
 0x1a3   : > { %v587_v63 = vpack.c.bf16 %v583_v60, %v582_v59 }
 0x1a4   : > { %v586_v0 = vpack.c.bf16 %v581_v62, %v580_v61 }
 0x1a6   : > { %1049 = vmatprep.mubr.bf16.mxu1 %v586_v0 }
 0x1a7   : > { %1050 = vmatmul.mubr.bf16.gmra.mrb[4].mxu1 %v587_v63 }
 0x272   : > { %v1047_v1 = vpop.f32.mrb[0].mxu1 }
 0x273   : > { %v686_v2 = vpop.f32.mrb[1].mxu1 }
 0x274   : > { %v1048_v3 = vpop.f32.mrb[2].mxu1 }
 0x275   : > { %v966_v4 = vpack.c.bf16 %v1048_v3, %v1047_v1  ;;  %v689_v5 = vpop.f32.mrb[3].mxu1 }
 0x276   : > { %v961_v6 = vpack.c.bf16 %v689_v5, %v686_v2 }
 0x277   : > { %978 = vst [vmem:[%s331_s11 + $0x8] sm:$0xff] %v966_v4  }
 0x278   : > { %962 = vst [vmem:[%s331_s11] sm:$0xff] %v961_v6  }
 0x27a   : > { %v1051_v7 = vpop.f32.mrb[4].mxu1 }
 0x27b   : > { %v702_v8 = vpop.f32.mrb[5].mxu1 }
 0x27c   : > { %v1052_v9 = vpop.f32.mrb[6].mxu1 }
 0x27d   : > { %v976_v10 = vpack.c.bf16 %v1052_v9, %v1051_v7  ;;  %v705_v11 = vpop.f32.mrb[7].mxu1 }
 0x27e   : > { %v971_v12 = vpack.c.bf16 %v705_v11, %v702_v8 }
 0x27f   : > { %980 = vst [vmem:[%s331_s11 + $0x18] sm:$0xff] %v976_v10  }
 0x280   : > { %979 = vst [vmem:[%s331_s11 + $0x10] sm:$0xff] %v971_v12  }
 0x281   : > { %1296 = shalt.err (!%p1293_p0)
}
 0x282   : > { %s1297_s12 = scalar_lea.hbm %s1689_s6, 512  ;;  %s1301_s7 = scalar_lea.hbm %s1795_s27, 1024 }
 0x283   : > { %p1298_p8 = scmp.ne.s32.totalorder %s1689_s6, %s1297_s12  ;;  %p1302_p9 = scmp.lt.u32.totalorder %s1689_s6, %s1795_s27 }
 0x284   : > { %p1303_p11 = scmp.lt.u32.totalorder %s1301_s7, %s1297_s12  ;;  %p1305_p4 = scmp.lt.u32.totalorder %s1297_s12, %s1689_s6 }
 0x285   : > { %p1299_p5 = pnand %p1298_p8, %p1796_p6 }
 0x286   : > { %p1304_p2 = por %p1303_p11, %p1302_p9 }
 0x287   : > { %p1300_p3 = pneg %p1299_p5 }
 0x288   : > { %p1306_p10 = por %p1305_p4, %p1304_p2 }
 0x28a   : > { %p1307_p7 = pnand %p1306_p10, %p1300_p3 }
 0x28c   : > { %1310 = shalt.err (!%p1307_p7)
}
 0x28d   : > { %s1388_s5 = smov 64   ;;  %s1389_s18 = smov 4  }
 0x28e   : > { %1065 = dma.vmem_to_hbm [thread:$0]  (%p1796_p6), %s1684_s25, 512, %s1689_s6, %s758_s8, %s1388_s5, %s1388_s5, %s1389_s18  }
 0x28f PF: > { %s1797_s28 = sld [smem:[#allocation16_spill]]  ;;  %s1798_s13 = sld [smem:[#allocation19_spill]] }
 0x290   : > { %s1799_s24 = sld [smem:[#allocation18_spill]] }
 0x295   : > { %s786_s26 = sand.u32 1, %s1797_s28   ;;  %p1800_p13 = scmp.ne.s32.totalorder %s1798_s13, 0 }
 0x296   : > { %p1801_p1 = scmp.ge.s32.totalorder %s1799_s24, 2  ;;  %s787_s11 = scalar_lea.sflag [#allocation5], %s786_s26 }
 0x298   : > { %p1082_p12 = pnand %p1801_p1, %p1800_p13 }
 0x29a   : > { %1352 = dma.done.wait (!%p1082_p12), %s787_s11, 512  }
 0x29b   : > { %1354 = vsyncadd (!%p1082_p12), %s787_s11, 4294966784  ;;  %s22_s23 = sadd.s32 1, %s1799_s24   ;;  %s1802_s29 = sld [smem:[#allocation17_spill]] }
 0x29c   : > { %p19_p0 = scmp.ge.s32.totalorder %s22_s23, 4   ;;  %s1803_s20 = sld [smem:[#allocation21_spill]] }
 0x29d   : > { %s1804_s10 = sld [smem:[#allocation20_spill]]  ;;  %s1805_s18 = smov %s1361_s19 }
 0x29e   : > { %s1807_s21 = smov %s1373_s22  ;;  %21 = sbr.rel (!%p19_p0) target bundleno = 11 (0xb), region = 113 }
 0x2a1   : > { %s1806_s19 = smov %s1802_s29 }
 0x2a3   : > { %s1808_s22 = smov %s1804_s10 }
 0x2a5   :  { %792 = vsyncpa [#allocation4], 1 }
 0x2a6   :  { %794 = vsyncpa [#allocation4 + $0x1], 1 }
 0x2a7   :  { %795 = vsyncpa [#allocation7], 1 }
 0x2a8   :  { %796 = vsyncpa [#allocation5], 1 }
 0x2a9   :  { %798 = vsyncpa [#allocation5 + $0x1], 1 }

</bundles_post_ra>
